<compile_context>
chip_gen: v6e
topology: v6e:2x2x1
jax: 0.10.0
libtpu: 0.0.40
codegen_flags: <defaults>
</compile_context>

<pallas_src>
import math

import jax
import jax.numpy as jnp
import numpy as np
from jax.experimental import pallas as pl
from jax.experimental.pallas import tpu as pltpu

LANES = 128


def _round_up(x, m):
    return -(-x // m) * m


def _as_rows(a, pad_value):
    """Flatten `a` into a lane-dense (rows, 128) view.

    The reshape is free (metadata only) when a.size is a multiple of 128 and
    spans >= 8 rows; otherwise a minimal pad with a *neutral* value is applied
    (log(1)=0 for likelihoods, 0 for x_hat/target) so the padded region never
    needs in-kernel lane masking.
    """
    flat = jnp.reshape(a, (-1,))
    n = int(flat.shape[0])
    rows = max(-(-n // LANES), 8)
    total = rows * LANES
    if total != n:
        flat = jnp.pad(flat, (0, total - n), constant_values=pad_value)
    return flat.reshape(rows, LANES)


def _make_kernel(*, lik_meta, dist_meta, tiles_cover, ncores,
                 bpp_scale, mse_scale, cls_scale, n_batch, n_classes):
    """lik_meta: tuple of (tile_rows, n_tiles, rows) per likelihood stream.
    dist_meta: (tile_rows, n_tiles, rows) shared by x_hat / target."""
    n_lik_streams = len(lik_meta)

    def _reduce_to_vreg(x, tile_r):
        # (tile_r, 128) f32 -> (8, 128): pure VALU adds of full vregs; keeps
        # the running sum in registers (no per-vreg accumulator load/store).
        return x.reshape(tile_r // 8, 8, LANES).sum(axis=0)

    def _row_mask(tile_r, base_row, n_rows):
        # Row-index mask (int32 safe for any realistic input size).
        gr = jax.lax.broadcasted_iota(jnp.int32, (tile_r, LANES), 0) + base_row
        return gr < n_rows

    def kernel(*refs):
        lik_refs = refs[:n_lik_streams]
        (xhat_ref, tgt_ref, logits_ref, labels_ref,
         out_ref, log_acc, sq_acc) = refs[n_lik_streams:]

        if ncores > 1:
            core = pl.program_id(0)
            step = pl.program_id(1)
            tile_idx = core + step * ncores           # round-robin ownership
            last_step = pl.num_programs(1) - 1
        else:
            step = pl.program_id(0)
            tile_idx = step
            last_step = pl.num_programs(0) - 1

        @pl.when(step == 0)
        def _():
            log_acc[...] = jnp.zeros_like(log_acc)
            sq_acc[...] = jnp.zeros_like(sq_acc)

        # ---- rate (bpp) streams: log + sublane-grouped accumulate ----------
        for i, (tile_r, n_tiles, n_rows) in enumerate(lik_meta):
            ref = lik_refs[i]

            def _acc_lik(masked, tile_r=tile_r, n_tiles=n_tiles,
                         n_rows=n_rows, ref=ref):
                lik = ref[...].astype(jnp.float32)
                if masked:
                    base = (n_tiles - 1) * tile_r
                    lik = jnp.where(_row_mask(tile_r, base, n_rows), lik, 1.0)
                log_acc[...] += _reduce_to_vreg(jnp.log(lik), tile_r)

            needs_mask = n_tiles * tile_r > n_rows
            if needs_mask:
                if n_tiles > 1:          # fast path: interior tiles, unmasked
                    pl.when(tile_idx < n_tiles - 1)(lambda f=_acc_lik: f(False))
                pl.when(tile_idx == n_tiles - 1)(lambda f=_acc_lik: f(True))
            elif n_tiles < tiles_cover:  # skip clamped dummy tiles entirely
                pl.when(tile_idx < n_tiles)(lambda f=_acc_lik: f(False))
            else:                        # steady state: no gating, no masking
                _acc_lik(False)

        # ---- distortion (mse) stream ---------------------------------------
        tile_d, n_tiles_d, n_rows_d = dist_meta

        def _acc_dist(masked):
            d = (xhat_ref[...].astype(jnp.float32)
                 - tgt_ref[...].astype(jnp.float32))
            if masked:
                base = (n_tiles_d - 1) * tile_d
                d = jnp.where(_row_mask(tile_d, base, n_rows_d), d, 0.0)
            sq_acc[...] += _reduce_to_vreg(d * d, tile_d)

        needs_mask_d = n_tiles_d * tile_d > n_rows_d
        if needs_mask_d:
            if n_tiles_d > 1:
                pl.when(tile_idx < n_tiles_d - 1)(lambda: _acc_dist(False))
            pl.when(tile_idx == n_tiles_d - 1)(lambda: _acc_dist(True))
        elif n_tiles_d < tiles_cover:
            pl.when(tile_idx < n_tiles_d)(lambda: _acc_dist(False))
        else:
            _acc_dist(False)

        # ---- finalize: one cross-lane reduce + tiny CE epilogue -------------
        @pl.when(step == last_step)
        def _():
            bpp_part = jnp.sum(log_acc[...]) * bpp_scale
            mse_part = jnp.sum(sq_acc[...]) * mse_scale
            lane = jax.lax.broadcasted_iota(jnp.int32, (8, LANES), 1)
            out_ref[...] = (jnp.where(lane == 0, bpp_part, 0.0)
                            + jnp.where(lane == 1, mse_part, 0.0))

            def _cls():
                # NOTE: cls is consumed from core 0's block only in the wrapper;
                # keep this gated to core 0 if the epilogue is ever changed.
                logits = logits_ref[...].astype(jnp.float32)
                m = jnp.max(logits, axis=-1, keepdims=True)
                lse = m + jnp.log(jnp.sum(jnp.exp(logits - m), axis=-1,
                                          keepdims=True))
                cls_iota = jax.lax.broadcasted_iota(
                    jnp.int32, (n_batch, n_classes), 1)
                onehot = (cls_iota == labels_ref[...]).astype(jnp.float32)
                picked = jnp.sum(logits * onehot, axis=-1, keepdims=True)
                cls_val = jnp.sum(lse - picked) * cls_scale
                out_ref[...] += jnp.where(lane == 2, cls_val, 0.0)

            if ncores > 1:
                pl.when(core == 0)(_cls)
            else:
                _cls()

    return kernel


def rate_distortion_loss(output, target, labels, lmbda=0.01):
    """JAX/Pallas equivalent of RateDistortionLoss.forward."""
    x_hat = output['x_hat']
    logits = jnp.asarray(output['y_class'])
    labels = jnp.asarray(labels, jnp.int32).reshape(-1, 1)

    lik_arrays = list(output['likelihoods'].values())
    # No concatenate / dtype upcast: each likelihood tensor is its own stream.
    lik_rows = [_as_rows(a, 1.0) for a in lik_arrays]
    xhat_rows = _as_rows(x_hat, 0.0)
    tgt_rows = _as_rows(target, 0.0)
    assert int(x_hat.size) == int(target.size), "x_hat/target size mismatch"

    N, _, H, W = target.shape
    num_pixels = N * H * W
    n_batch, n_classes = logits.shape
    n_lik_total = sum(int(a.size) for a in lik_arrays)
    n_dist = int(x_hat.size)

    # ---- generation-aware sizing -------------------------------------------
    kind = ""
    try:
        kind = jax.devices()[0].device_kind.lower()
    except Exception:
        pass
    is_v7 = ("v7" in kind) or ("tpu7" in kind)
    ncores = 2 if is_v7 else 1          # v7x: 2 TensorCores; v5e/v6e: 1
    tile_r_max = 4096 if is_v7 else 8192
    vmem_limit = (48 if is_v7 else 64) * 1024 * 1024
    stream_budget = (28 if is_v7 else 40) * 1024 * 1024  # double-buffered tiles

    streams = lik_rows + [xhat_rows, tgt_rows]
    rows_list = [int(s.shape[0]) for s in streams]
    row_bytes = [LANES * s.dtype.itemsize for s in streams]
    max_rows = max(rows_list)
    total_bytes = sum(r * b for r, b in zip(rows_list, row_bytes))

    tiles_cover = max(1,
                      -(-max_rows // tile_r_max),
                      -(-2 * total_bytes // stream_budget))
    steps = -(-tiles_cover // ncores)
    tiles_cover = steps * ncores

    def _tiling(rows):
        # Proportional tile: ~rows/tiles_cover, multiple of 8, never larger
        # than the biggest multiple of 8 that fits inside the array.
        cap = max(8, (rows // 8) * 8)
        tile = min(max(8, _round_up(-(-rows // tiles_cover), 8)), cap)
        return tile, -(-rows // tile)

    metas = [_tiling(r) for r in rows_list]
    needed = max(nt for _, nt in metas)
    if needed > tiles_cover:            # rare rounding edge case
        steps = -(-needed // ncores)
        tiles_cover = steps * ncores

    lik_meta = tuple((t, nt, rows_list[i]) for i, (t, nt) in
                     enumerate(metas[:len(lik_rows)]))
    tile_d, n_tiles_d = metas[len(lik_rows)]
    dist_meta = (tile_d, n_tiles_d, rows_list[len(lik_rows)])

    kernel = _make_kernel(
        lik_meta=lik_meta, dist_meta=dist_meta, tiles_cover=tiles_cover,
        ncores=ncores,
        bpp_scale=1.0 / (-math.log(2.0) * float(num_pixels)),
        mse_scale=1.0 / float(n_dist),
        cls_scale=1.0 / float(n_batch),
        n_batch=n_batch, n_classes=n_classes)

    def _make_map(n_tiles):
        if ncores > 1:
            if n_tiles < tiles_cover:
                return lambda c, t: (jnp.minimum(c + t * ncores, n_tiles - 1), 0)
            return lambda c, t: (c + t * ncores, 0)
        if n_tiles < tiles_cover:
            return lambda t: (jnp.minimum(t, n_tiles - 1), 0)
        return lambda t: (t, 0)

    in_specs = []
    for (tile_r, n_tiles, _), arr in zip(lik_meta, lik_rows):
        in_specs.append(pl.BlockSpec((tile_r, LANES), _make_map(n_tiles)))
    dist_map = _make_map(n_tiles_d)
    in_specs.append(pl.BlockSpec((tile_d, LANES), dist_map))
    in_specs.append(pl.BlockSpec((tile_d, LANES), dist_map))
    if ncores > 1:
        in_specs.append(pl.BlockSpec((n_batch, n_classes), lambda c, t: (0, 0)))
        in_specs.append(pl.BlockSpec((n_batch, 1), lambda c, t: (0, 0)))
        out_spec = pl.BlockSpec((8, LANES), lambda c, t: (c, 0))
        grid = (ncores, steps)
    else:
        in_specs.append(pl.BlockSpec((n_batch, n_classes), lambda t: (0, 0)))
        in_specs.append(pl.BlockSpec((n_batch, 1), lambda t: (0, 0)))
        out_spec = pl.BlockSpec((8, LANES), lambda t: (0, 0))
        grid = (steps,)

    cost = pl.CostEstimate(
        flops=int(2 * n_lik_total + 3 * n_dist + 6 * n_batch * n_classes),
        transcendentals=int(n_lik_total + n_batch * n_classes),
        bytes_accessed=int(total_bytes
                           + logits.size * logits.dtype.itemsize
                           + labels.size * 4 + ncores * 8 * LANES * 4))

    def _build(core_sem):
        sems = (core_sem, "arbitrary") if ncores > 1 else ("arbitrary",)
        return pl.pallas_call(
            kernel,
            out_shape=jax.ShapeDtypeStruct((ncores * 8, LANES), jnp.float32),
            grid_spec=pltpu.PrefetchScalarGridSpec(
                num_scalar_prefetch=0,
                grid=grid,
                in_specs=in_specs,
                out_specs=out_spec,
                scratch_shapes=[pltpu.VMEM((8, LANES), jnp.float32),
                                pltpu.VMEM((8, LANES), jnp.float32)]),
            compiler_params=pltpu.CompilerParams(
                dimension_semantics=sems,
                vmem_limit_bytes=vmem_limit),
            cost_estimate=cost,
        )

    inputs = tuple(lik_rows) + (xhat_rows, tgt_rows, logits, labels)
    if ncores > 1:
        core_sem = getattr(pltpu, "CORE_PARALLEL", "parallel")
        try:
            partials = _build(core_sem)(*inputs)
        except Exception:
            # Fallback if CORE_PARALLEL is rejected on this toolchain/chip.
            partials = _build("parallel")(*inputs)
    else:
        partials = _build("arbitrary")(*inputs)

    rows = partials.reshape(ncores, 8, LANES)[:, 0, :]   # (ncores, 128)
    bpp = jnp.sum(rows[:, 0])
    mse = jnp.sum(rows[:, 1])
    cls = rows[0, 2]                                     # CE computed on core 0 only
    loss = lmbda * (255.0 ** 2) * mse + bpp + cls
    return {'bpp_loss': bpp, 'mse_loss': mse, 'cls_loss': cls, 'loss': loss}


def _reference(output, target, labels, lmbda=0.01):
    N, _, H, W = target.shape
    num_pixels = N * H * W
    bpp = sum(jnp.sum(jnp.log(l)) / (-math.log(2) * num_pixels)
              for l in output['likelihoods'].values())
    mse = jnp.mean((output['x_hat'] - target) ** 2)
    logits = output['y_class']
    lse = jax.scipy.special.logsumexp(logits, axis=-1)
    picked = jnp.take_along_axis(logits, labels[:, None], axis=-1)[:, 0]
    cls = jnp.mean(lse - picked)
    return {
        'bpp_loss': bpp,
        'mse_loss': mse,
        'cls_loss': cls,
        'loss': lmbda * 255 ** 2 * mse + bpp + cls,
    }


if __name__ == "__main__":
    key = jax.random.PRNGKey(0)
    k1, k2, k3, k4, k5, k6 = jax.random.split(key, 6)

    N, C, H, W = 2, 4, 16, 16
    n_classes = 10

    target = jax.random.normal(k1, (N, C, H, W), jnp.float32)
    x_hat = target + 0.05 * jax.random.normal(k2, (N, C, H, W), jnp.float32)
    # likelihoods must be strictly positive probabilities
    lik_y = jax.random.uniform(k3, (N, 8, 4, 4), jnp.float32,
                               minval=0.01, maxval=1.0)
    lik_z = jax.random.uniform(k4, (N, 8, 2, 2), jnp.float32,
                               minval=0.01, maxval=1.0)
    y_class = jax.random.normal(k5, (N, n_classes), jnp.float32)
    labels = jax.random.randint(k6, (N,), 0, n_classes, jnp.int32)

    output = {
        'x_hat': x_hat,
        'likelihoods': {'y': lik_y, 'z': lik_z},
        'y_class': y_class,
    }

    got = rate_distortion_loss(output, target, labels, lmbda=0.01)
    jax.block_until_ready(got['loss'])

    want = _reference(output, target, labels, lmbda=0.01)
    for k in ('bpp_loss', 'mse_loss', 'cls_loss', 'loss'):
        np.testing.assert_allclose(np.asarray(got[k]), np.asarray(want[k]),
                                   rtol=1e-5, atol=1e-5)

    print("KERNEL_OK")
</pallas_src>

<mosaic_0001>
module attributes {stable_mosaic.version = 11 : i64} {
  func.func @kernel(%arg0: i32, %arg1: memref<8x128xf32, #tpu.memory_space<vmem>>, %arg2: memref<8x128xf32, #tpu.memory_space<vmem>>, %arg3: memref<16x128xf32, #tpu.memory_space<vmem>>, %arg4: memref<16x128xf32, #tpu.memory_space<vmem>>, %arg5: memref<2x10xf32, #tpu.memory_space<vmem>>, %arg6: memref<2x1xi32, #tpu.memory_space<vmem>>, %arg7: memref<8x128xf32, #tpu.memory_space<vmem>>, %arg8: memref<8x128xf32, #tpu.memory_space<vmem>>, %arg9: memref<8x128xf32, #tpu.memory_space<vmem>>) attributes {dimension_semantics = [#tpu.dimension_semantics<arbitrary>], iteration_bounds = array<i64: 1>, scalar_prefetch = 0 : i64, scratch_operands = 2 : i64, tpu.core_type = #tpu.core_type<tc>, window_params = [{transform_indices = @transform_0, window_bounds = array<i64: 8, 128>}, {transform_indices = @transform_1, window_bounds = array<i64: 8, 128>}, {transform_indices = @transform_2, window_bounds = array<i64: 16, 128>}, {transform_indices = @transform_3, window_bounds = array<i64: 16, 128>}, {pipeline_mode = #tpu.pipeline_mode<synchronous>, transform_indices = @transform_4, window_bounds = array<i64: 2, 10>}, {pipeline_mode = #tpu.pipeline_mode<synchronous>, transform_indices = @transform_5, window_bounds = array<i64: 2, 1>}, {pipeline_mode = #tpu.pipeline_mode<synchronous>, transform_indices = @transform_6, window_bounds = array<i64: 8, 128>}]} {
    %c0_i32 = arith.constant 0 : i32
    %0 = arith.cmpi eq, %arg0, %c0_i32 : i32
    %1 = arith.extui %0 : i1 to i32
    %c0_i32_0 = arith.constant 0 : i32
    %2 = arith.cmpi ne, %1, %c0_i32_0 : i32
    scf.if %2 {
      %cst_24 = arith.constant 0.000000e+00 : f32
      %29 = vector.broadcast %cst_24 : f32 to vector<8x128xf32>
      %c0_25 = arith.constant 0 : index
      %c0_26 = arith.constant 0 : index
      %30 = vector.load %arg8[%c0_25, %c0_26] : memref<8x128xf32, #tpu.memory_space<vmem>>, vector<8x128xf32>
      tpu.vector_store %arg8[%c0_25, %c0_26], %29 {strides = array<i32>} : memref<8x128xf32, #tpu.memory_space<vmem>>, vector<8x128xf32>,
      %cst_27 = arith.constant 0.000000e+00 : f32
      %31 = vector.broadcast %cst_27 : f32 to vector<8x128xf32>
      %c0_28 = arith.constant 0 : index
      %c0_29 = arith.constant 0 : index
      %32 = vector.load %arg9[%c0_28, %c0_29] : memref<8x128xf32, #tpu.memory_space<vmem>>, vector<8x128xf32>
      tpu.vector_store %arg9[%c0_28, %c0_29], %31 {strides = array<i32>} : memref<8x128xf32, #tpu.memory_space<vmem>>, vector<8x128xf32>,
    } else {
    }
    %c0 = arith.constant 0 : index
    %c0_1 = arith.constant 0 : index
    %3 = vector.load %arg1[%c0, %c0_1] : memref<8x128xf32, #tpu.memory_space<vmem>>, vector<8x128xf32>
    %c0_2 = arith.constant 0 : index
    %c0_3 = arith.constant 0 : index
    %4 = vector.load %arg8[%c0_2, %c0_3] : memref<8x128xf32, #tpu.memory_space<vmem>>, vector<8x128xf32>
    %5 = math.log %3 : vector<8x128xf32>
    %6 = vector.shape_cast %5 : vector<8x128xf32> to vector<1x8x128xf32>
    %cst = arith.constant dense<0.000000e+00> : vector<8x128xf32>
    %7 = vector.multi_reduction <add>, %6, %cst [0] : vector<1x8x128xf32> to vector<8x128xf32>
    %8 = arith.addf %4, %7 : vector<8x128xf32>
    %c0_4 = arith.constant 0 : index
    %c0_5 = arith.constant 0 : index
    %9 = vector.load %arg8[%c0_4, %c0_5] : memref<8x128xf32, #tpu.memory_space<vmem>>, vector<8x128xf32>
    tpu.vector_store %arg8[%c0_4, %c0_5], %8 {strides = array<i32>} : memref<8x128xf32, #tpu.memory_space<vmem>>, vector<8x128xf32>,
    %c0_6 = arith.constant 0 : index
    %c0_7 = arith.constant 0 : index
    %10 = vector.load %arg2[%c0_6, %c0_7] : memref<8x128xf32, #tpu.memory_space<vmem>>, vector<8x128xf32>
    %c0_8 = arith.constant 0 : index
    %c0_9 = arith.constant 0 : index
    %11 = vector.load %arg8[%c0_8, %c0_9] : memref<8x128xf32, #tpu.memory_space<vmem>>, vector<8x128xf32>
    %12 = math.log %10 : vector<8x128xf32>
    %13 = vector.shape_cast %12 : vector<8x128xf32> to vector<1x8x128xf32>
    %cst_10 = arith.constant dense<0.000000e+00> : vector<8x128xf32>
    %14 = vector.multi_reduction <add>, %13, %cst_10 [0] : vector<1x8x128xf32> to vector<8x128xf32>
    %15 = arith.addf %11, %14 : vector<8x128xf32>
    %c0_11 = arith.constant 0 : index
    %c0_12 = arith.constant 0 : index
    %16 = vector.load %arg8[%c0_11, %c0_12] : memref<8x128xf32, #tpu.memory_space<vmem>>, vector<8x128xf32>
    tpu.vector_store %arg8[%c0_11, %c0_12], %15 {strides = array<i32>} : memref<8x128xf32, #tpu.memory_space<vmem>>, vector<8x128xf32>,
    %c0_13 = arith.constant 0 : index
    %c0_14 = arith.constant 0 : index
    %17 = vector.load %arg3[%c0_13, %c0_14] : memref<16x128xf32, #tpu.memory_space<vmem>>, vector<16x128xf32>
    %c0_15 = arith.constant 0 : index
    %c0_16 = arith.constant 0 : index
    %18 = vector.load %arg4[%c0_15, %c0_16] : memref<16x128xf32, #tpu.memory_space<vmem>>, vector<16x128xf32>
    %19 = arith.subf %17, %18 : vector<16x128xf32>
    %c0_17 = arith.constant 0 : index
    %c0_18 = arith.constant 0 : index
    %20 = vector.load %arg9[%c0_17, %c0_18] : memref<8x128xf32, #tpu.memory_space<vmem>>, vector<8x128xf32>
    %21 = arith.mulf %19, %19 : vector<16x128xf32>
    %22 = vector.shape_cast %21 : vector<16x128xf32> to vector<2x8x128xf32>
    %cst_19 = arith.constant dense<0.000000e+00> : vector<8x128xf32>
    %23 = vector.multi_reduction <add>, %22, %cst_19 [0] : vector<2x8x128xf32> to vector<8x128xf32>
    %24 = arith.addf %20, %23 : vector<8x128xf32>
    %c0_20 = arith.constant 0 : index
    %c0_21 = arith.constant 0 : index
    %25 = vector.load %arg9[%c0_20, %c0_21] : memref<8x128xf32, #tpu.memory_space<vmem>>, vector<8x128xf32>
    tpu.vector_store %arg9[%c0_20, %c0_21], %24 {strides = array<i32>} : memref<8x128xf32, #tpu.memory_space<vmem>>, vector<8x128xf32>,
    %c0_i32_22 = arith.constant 0 : i32
    %26 = arith.cmpi eq, %arg0, %c0_i32_22 : i32
    %27 = arith.extui %26 : i1 to i32
    %c0_i32_23 = arith.constant 0 : i32
    %28 = arith.cmpi ne, %27, %c0_i32_23 : i32
    scf.if %28 {
      %c0_24 = arith.constant 0 : index
      %c0_25 = arith.constant 0 : index
      %29 = vector.load %arg8[%c0_24, %c0_25] : memref<8x128xf32, #tpu.memory_space<vmem>>, vector<8x128xf32>
      %30 = vector.shape_cast %29 : vector<8x128xf32> to vector<1x8x128xf32>
      %cst_26 = arith.constant dense<0.000000e+00> : vector<1xf32>
      %31 = vector.multi_reduction <add>, %30, %cst_26 [1, 2] : vector<1x8x128xf32> to vector<1xf32>
      %32 = vector.shape_cast %31 : vector<1xf32> to vector<1x1x1xf32>
      %33 = vector.extract %32[0, 0, 0] : f32 from vector<1x1x1xf32>
      %cst_27 = arith.constant -0.00281776371 : f32
      %34 = arith.mulf %33, %cst_27 : f32
      %c0_28 = arith.constant 0 : index
      %c0_29 = arith.constant 0 : index
      %35 = vector.load %arg9[%c0_28, %c0_29] : memref<8x128xf32, #tpu.memory_space<vmem>>, vector<8x128xf32>
      %36 = vector.shape_cast %35 : vector<8x128xf32> to vector<1x8x128xf32>
      %cst_30 = arith.constant dense<0.000000e+00> : vector<1xf32>
      %37 = vector.multi_reduction <add>, %36, %cst_30 [1, 2] : vector<1x8x128xf32> to vector<1xf32>
      %38 = vector.shape_cast %37 : vector<1xf32> to vector<1x1x1xf32>
      %39 = vector.extract %38[0, 0, 0] : f32 from vector<1x1x1xf32>
      %cst_31 = arith.constant 4.8828125E-4 : f32
      %40 = arith.mulf %39, %cst_31 : f32
      %41 = tpu.iota {dimensions = array<i32: 1>} : vector<8x128xi32>
      %c0_i32_32 = arith.constant 0 : i32
      %42 = vector.broadcast %c0_i32_32 : i32 to vector<8x128xi32>
      %43 = arith.cmpi eq, %41, %42 : vector<8x128xi32>
      %cst_33 = arith.constant 0.000000e+00 : f32
      %44 = vector.broadcast %34 : f32 to vector<8x128xf32>
      %45 = vector.broadcast %cst_33 : f32 to vector<8x128xf32>
      %46 = arith.select %43, %44, %45 : vector<8x128xi1>, vector<8x128xf32>
      %c1_i32 = arith.constant 1 : i32
      %47 = vector.broadcast %c1_i32 : i32 to vector<8x128xi32>
      %48 = arith.cmpi eq, %41, %47 : vector<8x128xi32>
      %cst_34 = arith.constant 0.000000e+00 : f32
      %49 = vector.broadcast %40 : f32 to vector<8x128xf32>
      %50 = vector.broadcast %cst_34 : f32 to vector<8x128xf32>
      %51 = arith.select %48, %49, %50 : vector<8x128xi1>, vector<8x128xf32>
      %52 = arith.addf %46, %51 : vector<8x128xf32>
      %c0_35 = arith.constant 0 : index
      %c0_36 = arith.constant 0 : index
      %53 = vector.load %arg7[%c0_35, %c0_36] : memref<8x128xf32, #tpu.memory_space<vmem>>, vector<8x128xf32>
      tpu.vector_store %arg7[%c0_35, %c0_36], %52 {strides = array<i32>} : memref<8x128xf32, #tpu.memory_space<vmem>>, vector<8x128xf32>,
      %c0_37 = arith.constant 0 : index
      %c0_38 = arith.constant 0 : index
      %54 = vector.load %arg5[%c0_37, %c0_38] : memref<2x10xf32, #tpu.memory_space<vmem>>, vector<2x10xf32>
      %cst_39 = arith.constant dense<0xFF800000> : vector<2xf32>
      %55 = vector.multi_reduction <maximumf>, %54, %cst_39 [1] : vector<2x10xf32> to vector<2xf32>
      %56 = vector.shape_cast %55 : vector<2xf32> to vector<2x1xf32>
      %57 = vector.broadcast %56 : vector<2x1xf32> to vector<2x10xf32>
      %58 = arith.subf %54, %57 : vector<2x10xf32>
      %59 = math.exp %58 : vector<2x10xf32>
      %cst_40 = arith.constant dense<0.000000e+00> : vector<2xf32>
      %60 = vector.multi_reduction <add>, %59, %cst_40 [1] : vector<2x10xf32> to vector<2xf32>
      %61 = vector.shape_cast %60 : vector<2xf32> to vector<2x1xf32>
      %62 = math.log %61 : vector<2x1xf32>
      %63 = arith.addf %56, %62 : vector<2x1xf32>
      %64 = tpu.iota {dimensions = array<i32: 1>} : vector<2x10xi32>
      %c0_41 = arith.constant 0 : index
      %c0_42 = arith.constant 0 : index
      %65 = vector.load %arg6[%c0_41, %c0_42] : memref<2x1xi32, #tpu.memory_space<vmem>>, vector<2x1xi32>
      %66 = vector.broadcast %65 : vector<2x1xi32> to vector<2x10xi32>
      %67 = arith.cmpi eq, %64, %66 : vector<2x10xi32>
      %68 = arith.extui %67 : vector<2x10xi1> to vector<2x10xi32>
      %69 = arith.sitofp %68 : vector<2x10xi32> to vector<2x10xf32>
      %70 = arith.mulf %54, %69 : vector<2x10xf32>
      %cst_43 = arith.constant dense<0.000000e+00> : vector<2xf32>
      %71 = vector.multi_reduction <add>, %70, %cst_43 [1] : vector<2x10xf32> to vector<2xf32>
      %72 = vector.shape_cast %71 : vector<2xf32> to vector<2x1xf32>
      %73 = arith.subf %63, %72 : vector<2x1xf32>
      %74 = vector.shape_cast %73 : vector<2x1xf32> to vector<1x2x1xf32>
      %cst_44 = arith.constant dense<0.000000e+00> : vector<1xf32>
      %75 = vector.multi_reduction <add>, %74, %cst_44 [1, 2] : vector<1x2x1xf32> to vector<1xf32>
      %76 = vector.shape_cast %75 : vector<1xf32> to vector<1x1x1xf32>
      %77 = vector.extract %76[0, 0, 0] : f32 from vector<1x1x1xf32>
      %cst_45 = arith.constant 5.000000e-01 : f32
      %78 = arith.mulf %77, %cst_45 : f32
      %c0_46 = arith.constant 0 : index
      %c0_47 = arith.constant 0 : index
      %79 = vector.load %arg7[%c0_46, %c0_47] : memref<8x128xf32, #tpu.memory_space<vmem>>, vector<8x128xf32>
      %c2_i32 = arith.constant 2 : i32
      %80 = vector.broadcast %c2_i32 : i32 to vector<8x128xi32>
      %81 = arith.cmpi eq, %41, %80 : vector<8x128xi32>
      %cst_48 = arith.constant 0.000000e+00 : f32
      %82 = vector.broadcast %78 : f32 to vector<8x128xf32>
      %83 = vector.broadcast %cst_48 : f32 to vector<8x128xf32>
      %84 = arith.select %81, %82, %83 : vector<8x128xi1>, vector<8x128xf32>
      %85 = arith.addf %79, %84 : vector<8x128xf32>
      %c0_49 = arith.constant 0 : index
      %c0_50 = arith.constant 0 : index
      %86 = vector.load %arg7[%c0_49, %c0_50] : memref<8x128xf32, #tpu.memory_space<vmem>>, vector<8x128xf32>
      tpu.vector_store %arg7[%c0_49, %c0_50], %85 {strides = array<i32>} : memref<8x128xf32, #tpu.memory_space<vmem>>, vector<8x128xf32>,
    } else {
    }
    return
  }
  func.func @transform_0(%arg0: i32) -> (i32, i32) {
    %c0_i32 = arith.constant 0 : i32
    %c0_i32_0 = arith.constant 0 : i32
    return %arg0, %c0_i32 : i32, i32
  }
  func.func @transform_1(%arg0: i32) -> (i32, i32) {
    %c0_i32 = arith.constant 0 : i32
    %c0_i32_0 = arith.constant 0 : i32
    return %arg0, %c0_i32 : i32, i32
  }
  func.func @transform_2(%arg0: i32) -> (i32, i32) {
    %c0_i32 = arith.constant 0 : i32
    %c0_i32_0 = arith.constant 0 : i32
    return %arg0, %c0_i32 : i32, i32
  }
  func.func @transform_3(%arg0: i32) -> (i32, i32) {
    %c0_i32 = arith.constant 0 : i32
    %c0_i32_0 = arith.constant 0 : i32
    return %arg0, %c0_i32 : i32, i32
  }
  func.func @transform_4(%arg0: i32) -> (i32, i32) {
    %c0_i32 = arith.constant 0 : i32
    %c0_i32_0 = arith.constant 0 : i32
    %c0_i32_1 = arith.constant 0 : i32
    return %c0_i32, %c0_i32_0 : i32, i32
  }
  func.func @transform_5(%arg0: i32) -> (i32, i32) {
    %c0_i32 = arith.constant 0 : i32
    %c0_i32_0 = arith.constant 0 : i32
    %c0_i32_1 = arith.constant 0 : i32
    return %c0_i32, %c0_i32_0 : i32, i32
  }
  func.func @transform_6(%arg0: i32) -> (i32, i32) {
    %c0_i32 = arith.constant 0 : i32
    %c0_i32_0 = arith.constant 0 : i32
    %c0_i32_1 = arith.constant 0 : i32
    return %c0_i32, %c0_i32_0 : i32, i32
  }
}

</mosaic_0001>

<bundles_post_ra>
// kernel: tpu_custom_call.1
= control target key start
LH: loop header
LB: loop body
LE: loop exit
PB: predicated region body
PF: predicated region fallthrough
CT: control target
= control target key end

     0   :  { %11 = vsyncpa [#allocation5], 0  ;;  %s410_s0 = inlined_call_operand.hbm [shape: f32[8,128], index: 0, kind: input, shape index: {}]   ;;  %s411_s1 = inlined_call_operand.hbm [shape: f32[8,128], index: 1, kind: input, shape index: {}]   ;;  %s412_s2 = inlined_call_operand.hbm [shape: f32[16,128], index: 2, kind: input, shape index: {}]   ;;  %s413_s3 = inlined_call_operand.hbm [shape: f32[16,128], index: 3, kind: input, shape index: {}]   ;;  %s414_s4 = inlined_call_operand.vmem [shape: f32[2,10], index: 4, kind: input, shape index: {}]   ;;  %s415_s5 = inlined_call_operand.vmem [shape: s32[2,1], index: 5, kind: input, shape index: {}]   ;;  %s416_s6 = inlined_call_operand.hbm [shape: f32[8,128], index: 6, kind: output, shape index: {}]  }
   0x1   :  { %12 = vsyncpa [#allocation8], 0 }
   0x2   :  { %13 = vsyncpa [#allocation11], 0 }
   0x3   :  { %14 = vsyncpa [#allocation6], 0  ;;  %s336_s21 = smov [#allocation7]   ;;  %s337_s23 = smov [#allocation4]  }
   0x4   :  { %s31_s22 = sshll.u32 %s336_s21, 4  ;;  %s21_s24 = sshll.u32 %s337_s23, 4  ;;  %s32_s22 = int_to_ptr.vmem [resolvable:$true] %s31_s22  ;;  %s22_s24 = int_to_ptr.vmem [resolvable:$true] %s21_s24 }
   0x5   :  { %s236_s25 = scalar_lea.vmem %s32_s22, 128  ;;  %p241_p1 = scmp.lt.s32.totalorder %s32_s22, %s32_s22 }
   0x6   :  { %p237_p0 = scmp.ne.s32.totalorder %s32_s22, %s236_s25  ;;  %p242_p2 = scmp.lt.s32.totalorder %s236_s25, %s236_s25 }
   0x8   :  { %p243_p3 = por %p242_p2, %p241_p1 }
   0xa   :  { %p244_p4 = pnand %p243_p3, %p237_p0 }
   0xc   :  { %247 = shalt.err (!%p244_p4)
}
   0xd   :  { %34 = dma.hbm_to_vmem [thread:$0]  %s411_s1, 128, %s32_s22, [#allocation8]  }
   0xe   :  { %s256_s28 = scalar_lea.vmem %s22_s24, 128  ;;  %p261_p6 = scmp.lt.s32.totalorder %s22_s24, %s22_s24 }
   0xf   :  { %p257_p5 = scmp.ne.s32.totalorder %s22_s24, %s256_s28  ;;  %p262_p7 = scmp.lt.s32.totalorder %s256_s28, %s256_s28 }
  0x11   :  { %p263_p8 = por %p262_p7, %p261_p6 }
  0x13   :  { %p264_p9 = pnand %p263_p8, %p257_p5 }
  0x15   :  { %267 = shalt.err (!%p264_p9)
}
  0x16   :  { %24 = dma.hbm_to_vmem [thread:$0]  %s410_s0, 128, %s22_s24, [#allocation5]  }
  0x17   :  { %s338_s7 = smov [#allocation9]  }
  0x18   :  { %s40_s8 = sshll.u32 %s338_s7, 4  ;;  %s41_s8 = int_to_ptr.vmem [resolvable:$true] %s40_s8 }
  0x19   :  { %s276_s9 = scalar_lea.vmem %s41_s8, 256  ;;  %p281_p11 = scmp.lt.s32.totalorder %s41_s8, %s41_s8 }
  0x1a   :  { %p277_p10 = scmp.ne.s32.totalorder %s41_s8, %s276_s9  ;;  %p282_p12 = scmp.lt.s32.totalorder %s276_s9, %s276_s9 }
  0x1c   :  { %p283_p13 = por %p282_p12, %p281_p11 }
  0x1e   :  { %p284_p0 = pnand %p283_p13, %p277_p10 }
  0x20   :  { %287 = shalt.err (!%p284_p0)
}
  0x21   :  { %s339_s1 = smov 128   ;;  %s340_s10 = smov 8  }
  0x22   :  { %46 = dma.hbm_to_vmem [thread:$0]  %s412_s2, 256, %s41_s8, [#allocation8], %s339_s1, %s339_s1, %s340_s10  }
  0x23   :  { %s341_s13 = smov [#allocation10]  }
  0x24   :  { %s52_s14 = sshll.u32 %s341_s13, 4  ;;  %s53_s14 = int_to_ptr.vmem [resolvable:$true] %s52_s14 }
  0x25   :  { %s296_s0 = scalar_lea.vmem %s53_s14, 256  ;;  %p301_p2 = scmp.lt.s32.totalorder %s53_s14, %s53_s14 }
  0x26   :  { %p297_p1 = scmp.ne.s32.totalorder %s53_s14, %s296_s0  ;;  %p302_p3 = scmp.lt.s32.totalorder %s296_s0, %s296_s0 }
  0x28   :  { %p303_p4 = por %p302_p3, %p301_p2 }
  0x2a   :  { %p304_p5 = pnand %p303_p4, %p297_p1 }
  0x2c   :  { %307 = shalt.err (!%p304_p5)
}
  0x2d   :  { %58 = dma.hbm_to_vmem [thread:$0]  %s413_s3, 256, %s53_s14, [#allocation11], %s339_s1, %s339_s1, %s340_s10  }
  0x2e   :  { %328 = dma.done.wait [#allocation5], 128  }
  0x2f   :  { %329 = vsyncadd [#allocation5], 4294967168 }
  0x30   :  { %330 = dma.done.wait [#allocation8], 384  }
  0x31   :  { %331 = vsyncadd [#allocation8], 4294966912 }
  0x32   :  { %332 = dma.done.wait [#allocation11], 256  }
  0x33   :  { %333 = vsyncadd [#allocation11], 4294967040  ;;  %v342_v0 = vmov 0   ;;  %vm143_vm0 = vcmask 74752   ;;  %v142_v1 = vld [vmem:[%s414_s4] sm:$0x3]  ;;  %v132_v9 = vlaneseq }
  0x34   :  { %219 = vset.pattern.permute.xlu0 %v342_v0  ;;  %v144_v2 = vsel %vm143_vm0, %v142_v1, -inf  ;;  %v156_v3 = vld [vmem:[%s415_s5] sm:$0x3]  ;;  %v88_v7 = vld [vmem:[#allocation7] sm:$0xff]  ;;  %v343_v12 = vmov 0.0   ;;  %v95_v23 = vld [vmem:[#allocation9] sm:$0xff] }
  0x35   :  { %145 = vmax.xlane.f32.xlu0 %v144_v2  ;;  %v81_v5 = vld [vmem:[#allocation4] sm:$0xff]  ;;  %v399_v10 = vand.u32 127, %v132_v9  ;;  %v96_v24 = vld [vmem:[#allocation9 + $0x8] sm:$0xff]  ;;  %v98_v26 = vld [vmem:[#allocation10 + $0x8] sm:$0xff]  ;;  %vm168_vm2 = vcmask 1024   ;;  %s344_s23 = smov [#allocation12]  }
  0x36   :  { %220 = vlog2.f32 %v81_v5  ;;  %v97_v25 = vld [vmem:[#allocation10] sm:$0xff]  ;;  %v100_v28 = vsub.f32 %v96_v24, %v98_v26  ;;  %s192_s24 = sshll.u32 %s344_s23, 4  ;;  %s193_s24 = int_to_ptr.vmem [resolvable:$true] %s192_s24 }
  0x37   :  { %222 = vlog2.f32 %v88_v7  ;;  %v99_v27 = vsub.f32 %v95_v23, %v97_v25  ;;  %vm134_vm3 = vcmp.eq.s32.totalorder %v399_v10, 0  ;;  %vm137_vm4 = vcmp.eq.s32.totalorder %v399_v10, 1  ;;  %s308_s25 = scalar_lea.vmem %s193_s24, 128  ;;  %p313_p7 = scmp.lt.s32.totalorder %s193_s24, %s193_s24 }
  0x38   :  { %v103_v30 = vmul.f32 %v100_v28, %v100_v28  ;;  %vm181_vm5 = vcmp.eq.s32.totalorder %v399_v10, 2  ;;  %p309_p6 = scmp.ne.s32.totalorder %s193_s24, %s308_s25  ;;  %p314_p8 = scmp.lt.s32.totalorder %s308_s25, %s308_s25 }
  0x39   :  { %v102_v29 = vmul.f32 %v99_v27, %v99_v27 }
  0x3a   :  { %p315_p9 = por %p314_p8, %p313_p7 }
  0x3b   :  { %v104_v31 = vadd.f32 %v103_v30, %v102_v29 }
  0x3c   :  { %p316_p10 = pnand %p315_p9, %p309_p6 }
  0x43   :  { %v221_v14 = vpop.eup %220 }
  0x44   :  { %v223_v15 = vpop.eup %222  ;;  %v84_v19 = vmul.f32 0.6931472, %v221_v14 }
  0x45   :  { %v91_v20 = vmul.f32 0.6931472, %v223_v15 }
  0x47   :  { %v93_v22 = vadd.f32 %v91_v20, %v84_v19 }
  0x4b   :  { %158 = vperm.xlu0 %219, %v156_v3  }
  0xbe   :  { %v146_v4 = vpop.xlane.xlu0 %145 }
  0xbf   :  { %v147_v6 = vsub.f32 %v142_v1, %v146_v4 }
  0xc1   :  { %v148_v8 = vmul.f32 1.442695, %v147_v6 }
  0xc3   :  { %224 = vpow2.f32 %v148_v8 }
  0xc6   :  { %v159_v11 = vpop.permute.xlu0 %158 }
  0xc7   :  { %vm160_vm1 = vcmp.eq.s32.totalorder %v399_v10, %v159_v11 }
  0xc8   :  { %v203_v13 = vsel %vm160_vm1, 1.0, %v343_v12 }
  0xc9   :  { %v163_v16 = vmul.f32 %v203_v13, %v142_v1 }
  0xcb   :  { %v164_v21 = vsel %vm143_vm0, %v163_v16, 0.0 }
  0xd0   :  { %v225_v17 = vpop.eup %224 }
  0xd1   :  { %v150_v18 = vsel %vm143_vm0, %v225_v17, 0.0 }
  0xd2   :  { %151 = vadd.xlane.f32.xlu1 %v150_v18 }
  0xd6   :  { %165 = vadd.xlane.f32.xlu1 %v164_v21 }
  0xda   :  { %111 = vadd.xlane.f32.xlu1 %v93_v22 }
  0xde   :  { %122 = vadd.xlane.f32.xlu1 %v104_v31 }
 0x15b   :  { %v152_v32 = vpop.xlane.xlu1 %151 }
 0x15c   :  { %226 = vlog2.f32 %v152_v32 }
 0x15f   :  { %v166_v33 = vpop.xlane.xlu1 %165 }
 0x163   :  { %v112_v34 = vpop.xlane.xlu1 %111 }
 0x164   :  { %v113_v35 = vrot.slane %v112_v34, 4 }
 0x166   :  { %v114_v36 = vadd.f32 %v113_v35, %v112_v34 }
 0x167   :  { %v123_v43 = vpop.xlane.xlu1 %122 }
 0x168   :  { %v115_v37 = vrot.slane %v114_v36, 2  ;;  %v124_v45 = vrot.slane %v123_v43, 4 }
 0x169   :  { %v227_v38 = vpop.eup %226 }
 0x16a   :  { %v154_v39 = vmul.f32 0.6931472, %v227_v38  ;;  %v116_v40 = vadd.f32 %v115_v37, %v114_v36  ;;  %v125_v48 = vadd.f32 %v124_v45, %v123_v43 }
 0x16c   :  { %v155_v41 = vadd.f32 %v154_v39, %v146_v4  ;;  %v117_v42 = vrot.slane %v116_v40, 1  ;;  %v126_v49 = vrot.slane %v125_v48, 2 }
 0x16e   :  { %v167_v44 = vsub.f32 %v155_v41, %v166_v33  ;;  %v118_v46 = vadd.f32 %v117_v42, %v116_v40  ;;  %v127_v50 = vadd.f32 %v126_v49, %v125_v48 }
 0x170   :  { %v169_v47 = vsel %vm168_vm2, %v167_v44, 0.0  ;;  %204 = vpush %v118_v46  ;;  %v128_v51 = vrot.slane %v127_v50, 1 }
 0x171   :  { %170 = vadd.xlane.f32.xlu1 %v169_v47 }
 0x172   :  { %v129_v52 = vadd.f32 %v128_v51, %v127_v50 }
 0x174   :  { %206 = vpush %v129_v52 }
 0x1a1   :  { %s205_s3 = spop %204 }
 0x1a2   :  { %s120_s5 = smul.f32 -0.0028177637, %s205_s3 }
 0x1a4   :  { %v135_v60 = vstv %s120_s5 }
 0x1a5   :  { %s207_s4 = spop %206  ;;  %v136_v62 = vsel %vm134_vm3, %v135_v60, 0.0 }
 0x1a6   :  { %s131_s20 = smul.f32 0.00048828125, %s207_s4 }
 0x1a8   :  { %v138_v61 = vstv %s131_s20 }
 0x1a9   :  { %v139_v63 = vsel %vm137_vm4, %v138_v61, 0.0 }
 0x1aa   :  { %v140_v0 = vadd.f32 %v139_v63, %v136_v62 }
 0x1fa   :  { %v171_v53 = vpop.xlane.xlu1 %170 }
 0x1fb   :  { %v172_v54 = vrot.slane %v171_v53, 4 }
 0x1fd   :  { %v173_v55 = vadd.f32 %v172_v54, %v171_v53 }
 0x1ff   :  { %v174_v56 = vrot.slane %v173_v55, 2 }
 0x201   :  { %v175_v57 = vadd.f32 %v174_v56, %v173_v55 }
 0x203   :  { %v176_v58 = vrot.slane %v175_v57, 1 }
 0x205   :  { %v177_v59 = vadd.f32 %v176_v58, %v175_v57 }
 0x207   :  { %208 = vpush %v177_v59 }
 0x238   :  { %s209_s21 = spop %208 }
 0x239   :  { %s179_s22 = smul.f32 0.5, %s209_s21 }
 0x23b   :  { %v182_v1 = vstv %s179_s22 }
 0x23c   :  { %v183_v2 = vsel %vm181_vm5, %v182_v1, 0.0 }
 0x23d   :  { %v184_v3 = vadd.f32 %v183_v2, %v140_v0 }
 0x23f   :  { %185 = vst [vmem:[#allocation12] sm:$0xff] %v184_v3 }
 0x240   :  { %319 = shalt.err (!%p316_p10)
}
 0x241   :  { %195 = dma.vmem_to_hbm [thread:$0]  %s193_s24, 128, %s416_s6, [#allocation6]  }
 0x242   :  { %334 = dma.done.wait [#allocation6], 128  }
 0x243   :  { %335 = vsyncadd [#allocation6], 4294967168 }
 0x244   :  { %199 = vsyncpa [#allocation5], 1 }
 0x245   :  { %200 = vsyncpa [#allocation8], 1 }
 0x246   :  { %201 = vsyncpa [#allocation11], 1 }
 0x247   :  { %202 = vsyncpa [#allocation6], 1 }

</bundles_post_ra>
